<compile_context>
chip_gen: v6e
topology: v6e:2x2x1
jax: 0.10.0
libtpu: 0.0.40
codegen_flags: <defaults>
</compile_context>

<pallas_src>
import jax
import jax.numpy as jnp
from jax.experimental import pallas as pl
from jax.experimental.pallas import tpu as pltpu


def _mv_lstm_kernel(x_ref, hinit_ref, cinit_ref, wx_ref, bx_ref,
                    wbig_ref, wlin_ref, blin_ref, out_ref, xb_ref):
    Bp, F = out_ref.shape
    H2 = hinit_ref.shape[1]            # 2H  (lane-packed state width)
    H = H2 // 2
    H8 = wbig_ref.shape[1]             # 8H  (two layers x 4 gates)
    S = x_ref.shape[0] // Bp - 1       # real timesteps (last row-block is pad)

    # ---- hoisted input projection for ALL timesteps: one matmul, already in
    #      the interleaved gate layout, biases folded in.  Staged in VMEM so
    #      it does not occupy vregs across the unrolled recurrence. ----
    xb_ref[...] = (jnp.dot(x_ref[...], wx_ref[...],
                           preferred_element_type=jnp.float32) + bx_ref[...])

    wbig = wbig_ref[...]               # (2H, 8H) fused recurrent weight

    # lane masks, hoisted once (JAX does not CSE broadcast_in_dim).
    lane8 = jax.lax.broadcasted_iota(jnp.int32, (Bp, H8), 1)
    g_mask = (lane8 >= 4 * H) & (lane8 < 6 * H)          # g-gates, both layers
    lane2 = jax.lax.broadcasted_iota(jnp.int32, (Bp, H2), 1)
    l0_mask = lane2 < H                                  # layer-0 lanes

    def wavefront(hpack, cpack, xb):
        # one fused MXU pass: [gates0(t+1) | gates1(t)], gate-interleaved
        gates = jnp.dot(hpack, wbig, preferred_element_type=jnp.float32) + xb
        # single EUP pass: tanh(x) = 2*sigmoid(2x) - 1 on the g lanes
        pre = jnp.where(g_mask, gates + gates, gates)
        s = jax.nn.sigmoid(pre)
        act = jnp.where(g_mask, s + s - 1.0, s)
        i_p = act[:, 0 * H2:1 * H2]                      # [i0 | i1]
        f_p = act[:, 1 * H2:2 * H2]                      # [f0 | f1]
        g_p = act[:, 2 * H2:3 * H2]                      # [g0 | g1]
        o_p = act[:, 3 * H2:4 * H2]                      # [o0 | o1]
        c_new = f_p * cpack + i_p * g_p                  # both layers at once
        h_new = o_p * jnp.tanh(c_new)
        return h_new, c_new

    hpack = jnp.broadcast_to(hinit_ref[...], (Bp, H2))   # [h0_init | h1_init]
    cpack = jnp.broadcast_to(cinit_ref[...], (Bp, H2))   # [c0_init | c1_init]

    # "step -1": only the layer-0 half (step 0) is valid; keep the initial
    # layer-1 state in the layer-1 lanes via a lane select.
    h_new, c_new = wavefront(hpack, cpack, xb_ref[0:Bp, :])
    hpack = jnp.where(l0_mask, h_new, hpack)
    cpack = jnp.where(l0_mask, c_new, cpack)

    # fully unrolled wavefront: iteration t fuses layer-1(step t) with
    # layer-0(step t+1).  S+1 serial MXU matmuls total (incl. prologue).
    hprev = hpack
    for t in range(S):
        hprev = hpack
        hpack, cpack = wavefront(hpack, cpack,
                                 xb_ref[(t + 1) * Bp:(t + 2) * Bp, :])

    # final hidden: h0_{S-1} sits in hprev's layer-0 lanes, h1_{S-1} in
    # hpack's layer-1 lanes -> single lane select, no relayout.
    hfin = jnp.where(l0_mask, hprev, hpack)              # (Bp, 2H) == [h0|h1]
    out = jnp.dot(hfin, wlin_ref[...], preferred_element_type=jnp.float32)
    out_ref[...] = (out + blin_ref[...]).astype(out_ref.dtype)


def mv_lstm_forward(x, params, h_init, c_init):
    """x: (B, S, F) float32.  Returns (B, F)."""
    B, S, F = x.shape
    H = params["whh0_t"].shape[0]
    Bp = max(8, ((B + 7) // 8) * 8)

    # time-major, batch padded to a full sublane group, plus ONE extra zero
    # time-block (feeds the discarded half of the last wavefront iteration);
    # flattened to 2-D so the prologue projection is a single matmul.
    xT = jnp.transpose(x, (1, 0, 2))                       # (S, B, F)
    xT = jnp.pad(xT, ((0, 1), (0, Bp - B), (0, 0)))        # (S+1, Bp, F)
    x2d = xT.reshape((S + 1) * Bp, F)

    # interleaved gate layout [i0|i1|f0|f1|g0|g1|o0|o1]
    def interleave(a, b):                                  # (r,4H),(r,4H)->(r,8H)
        r = a.shape[0]
        return jnp.stack([a.reshape(r, 4, H), b.reshape(r, 4, H)],
                         axis=2).reshape(r, 8 * H)

    zeros_h = jnp.zeros((H, 4 * H), jnp.float32)
    # fused wavefront weight: rows 0:H <- h0(t), rows H:2H <- h1(t-1)
    wbig = jnp.concatenate(
        [interleave(params["whh0_t"], params["wih1_t"]),
         interleave(zeros_h, params["whh1_t"])], axis=0)            # (2H, 8H)
    wx = interleave(params["wih0_t"], jnp.zeros((F, 4 * H), jnp.float32))  # (F, 8H)
    bx = interleave(params["b0"], params["b1"])                            # (1, 8H)

    hinit = h_init.reshape(1, 2 * H)       # lane-packed [h0_init | h1_init]
    cinit = c_init.reshape(1, 2 * H)

    operands = (x2d, hinit, cinit, wx, bx, wbig,
                params["wlin_t"], params["blin"])

    def full_spec(a):
        nd = a.ndim
        return pl.BlockSpec(a.shape, lambda i, _nd=nd: (0,) * _nd)

    out = pl.pallas_call(
        _mv_lstm_kernel,
        out_shape=jax.ShapeDtypeStruct((Bp, F), jnp.float32),
        grid_spec=pltpu.PrefetchScalarGridSpec(
            num_scalar_prefetch=0,
            grid=(1,),                                     # single invocation
            in_specs=[full_spec(a) for a in operands],
            out_specs=pl.BlockSpec((Bp, F), lambda i: (0, 0)),
            scratch_shapes=[pltpu.VMEM(((S + 1) * Bp, 8 * H), jnp.float32)],
        ),
        compiler_params=pltpu.CompilerParams(
            dimension_semantics=("arbitrary",)),
    )(*operands)
    return out[:B]


# ---------------------------------------------------------------------------
# pure-JAX reference (mirrors torch.nn.LSTM semantics) for correctness check
# ---------------------------------------------------------------------------
def mv_lstm_reference(x, params, h_init, c_init):
    B, S, F = x.shape
    H = params["whh0_t"].shape[0]

    def cell(x_in, h, c, wih_t, whh_t, b):
        gates = x_in @ wih_t + h @ whh_t + b
        i = jax.nn.sigmoid(gates[:, 0 * H:1 * H])
        f = jax.nn.sigmoid(gates[:, 1 * H:2 * H])
        g = jnp.tanh(gates[:, 2 * H:3 * H])
        o = jax.nn.sigmoid(gates[:, 3 * H:4 * H])
        c_new = f * c + i * g
        return o * jnp.tanh(c_new), c_new

    h0 = jnp.broadcast_to(h_init[0:1], (B, H))
    c0 = jnp.broadcast_to(c_init[0:1], (B, H))
    h1 = jnp.broadcast_to(h_init[1:2], (B, H))
    c1 = jnp.broadcast_to(c_init[1:2], (B, H))
    for t in range(S):
        h0, c0 = cell(x[:, t, :], h0, c0, params["wih0_t"], params["whh0_t"], params["b0"])
        h1, c1 = cell(h0, h1, c1, params["wih1_t"], params["whh1_t"], params["b1"])
    h_flat = jnp.concatenate([h0, h1], axis=-1)              # (B, 2H)
    return h_flat @ params["wlin_t"] + params["blin"]


def make_params(key, n_features, n_hidden):
    """Deterministic init matching PyTorch LSTM/Linear parameter shapes."""
    H, F = n_hidden, n_features
    k = 1.0 / jnp.sqrt(H)
    keys = jax.random.split(key, 12)
    u = lambda kk, shape: jax.random.uniform(kk, shape, jnp.float32, -k, k)

    # layer 0: W_ih (4H, F), W_hh (4H, H), b_ih, b_hh (4H,)
    wih0, whh0 = u(keys[0], (4 * H, F)), u(keys[1], (4 * H, H))
    bih0, bhh0 = u(keys[2], (4 * H,)), u(keys[3], (4 * H,))
    # layer 1: W_ih (4H, H), W_hh (4H, H)
    wih1, whh1 = u(keys[4], (4 * H, H)), u(keys[5], (4 * H, H))
    bih1, bhh1 = u(keys[6], (4 * H,)), u(keys[7], (4 * H,))
    # Linear: (F, 2H), (F,)
    kl = 1.0 / jnp.sqrt(2 * H)
    wlin = jax.random.uniform(keys[8], (F, 2 * H), jnp.float32, -kl, kl)
    blin = jax.random.uniform(keys[9], (F,), jnp.float32, -kl, kl)

    return {
        "wih0_t": wih0.T, "whh0_t": whh0.T, "b0": (bih0 + bhh0).reshape(1, 4 * H),
        "wih1_t": wih1.T, "whh1_t": whh1.T, "b1": (bih1 + bhh1).reshape(1, 4 * H),
        "wlin_t": wlin.T, "blin": blin.reshape(1, F),
    }


if __name__ == "__main__":
    n_features, seq_len, n_hidden, n_layers = 4, 8, 32, 2
    batch = 2

    key = jax.random.PRNGKey(0)
    kx, kp = jax.random.split(key)
    x = jax.random.normal(kx, (batch, seq_len, n_features), jnp.float32)
    params = make_params(kp, n_features, n_hidden)

    # init_hidden(): zeros of shape (n_layers, n_hidden), repeated over batch
    h_init = jnp.zeros((n_layers, n_hidden), jnp.float32)
    c_init = jnp.zeros((n_layers, n_hidden), jnp.float32)

    out = mv_lstm_forward(x, params, h_init, c_init)
    out = jax.block_until_ready(out)

    ref = mv_lstm_reference(x, params, h_init, c_init)
    assert out.shape == (batch, n_features)
    assert jnp.allclose(out, ref, atol=1e-5, rtol=1e-5), (out, ref)

    # TODO(synk): the module's self.hidden side-effect update (mean of final
    # states) is host-side state, not part of the returned tensor; omitted.
    print("KERNEL_OK")
</pallas_src>

<mosaic_0001>
module attributes {stable_mosaic.version = 11 : i64} {
  func.func @_mv_lstm_kernel(%arg0: i32, %arg1: memref<72x4xf32, #tpu.memory_space<vmem>>, %arg2: memref<1x64xf32, #tpu.memory_space<vmem>>, %arg3: memref<1x64xf32, #tpu.memory_space<vmem>>, %arg4: memref<4x256xf32, #tpu.memory_space<vmem>>, %arg5: memref<1x256xf32, #tpu.memory_space<vmem>>, %arg6: memref<64x256xf32, #tpu.memory_space<vmem>>, %arg7: memref<64x4xf32, #tpu.memory_space<vmem>>, %arg8: memref<1x4xf32, #tpu.memory_space<vmem>>, %arg9: memref<8x4xf32, #tpu.memory_space<vmem>>, %arg10: memref<72x256xf32, #tpu.memory_space<vmem>>) attributes {dimension_semantics = [#tpu.dimension_semantics<arbitrary>], iteration_bounds = array<i64: 1>, scalar_prefetch = 0 : i64, scratch_operands = 1 : i64, tpu.core_type = #tpu.core_type<tc>, window_params = [{pipeline_mode = #tpu.pipeline_mode<synchronous>, transform_indices = @transform_0, window_bounds = array<i64: 72, 4>}, {pipeline_mode = #tpu.pipeline_mode<synchronous>, transform_indices = @transform_1, window_bounds = array<i64: 1, 64>}, {pipeline_mode = #tpu.pipeline_mode<synchronous>, transform_indices = @transform_2, window_bounds = array<i64: 1, 64>}, {pipeline_mode = #tpu.pipeline_mode<synchronous>, transform_indices = @transform_3, window_bounds = array<i64: 4, 256>}, {pipeline_mode = #tpu.pipeline_mode<synchronous>, transform_indices = @transform_4, window_bounds = array<i64: 1, 256>}, {pipeline_mode = #tpu.pipeline_mode<synchronous>, transform_indices = @transform_5, window_bounds = array<i64: 64, 256>}, {pipeline_mode = #tpu.pipeline_mode<synchronous>, transform_indices = @transform_6, window_bounds = array<i64: 64, 4>}, {pipeline_mode = #tpu.pipeline_mode<synchronous>, transform_indices = @transform_7, window_bounds = array<i64: 1, 4>}, {pipeline_mode = #tpu.pipeline_mode<synchronous>, transform_indices = @transform_8, window_bounds = array<i64: 8, 4>}]} {
    %c0 = arith.constant 0 : index
    %c0_0 = arith.constant 0 : index
    %0 = vector.load %arg1[%c0, %c0_0] : memref<72x4xf32, #tpu.memory_space<vmem>>, vector<72x4xf32>
    %c0_1 = arith.constant 0 : index
    %c0_2 = arith.constant 0 : index
    %1 = vector.load %arg4[%c0_1, %c0_2] : memref<4x256xf32, #tpu.memory_space<vmem>>, vector<4x256xf32>
    %cst = arith.constant dense<0.000000e+00> : vector<72x256xf32>
    %2 = tpu.matmul %0, %1, %cst {dimension_numbers = #tpu.dot_dimension_numbers<[1], [0], [0], [1], [0, 0, 1, 1], [], []>} : vector<72x4xf32>, vector<4x256xf32>, vector<72x256xf32> -> vector<72x256xf32>
    %c0_3 = arith.constant 0 : index
    %c0_4 = arith.constant 0 : index
    %3 = vector.load %arg5[%c0_3, %c0_4] : memref<1x256xf32, #tpu.memory_space<vmem>>, vector<1x256xf32>
    %4 = vector.broadcast %3 : vector<1x256xf32> to vector<72x256xf32>
    %5 = arith.addf %2, %4 : vector<72x256xf32>
    %c0_5 = arith.constant 0 : index
    %c0_6 = arith.constant 0 : index
    %6 = vector.load %arg10[%c0_5, %c0_6] : memref<72x256xf32, #tpu.memory_space<vmem>>, vector<72x256xf32>
    tpu.vector_store %arg10[%c0_5, %c0_6], %5 {strides = array<i32>} : memref<72x256xf32, #tpu.memory_space<vmem>>, vector<72x256xf32>,
    %c0_7 = arith.constant 0 : index
    %c0_8 = arith.constant 0 : index
    %7 = vector.load %arg6[%c0_7, %c0_8] : memref<64x256xf32, #tpu.memory_space<vmem>>, vector<64x256xf32>
    %8 = tpu.iota {dimensions = array<i32: 1>} : vector<8x256xi32>
    %c128_i32 = arith.constant 128 : i32
    %9 = vector.broadcast %c128_i32 : i32 to vector<8x256xi32>
    %10 = arith.cmpi sge, %8, %9 : vector<8x256xi32>
    %c192_i32 = arith.constant 192 : i32
    %11 = vector.broadcast %c192_i32 : i32 to vector<8x256xi32>
    %12 = arith.cmpi slt, %8, %11 : vector<8x256xi32>
    %13 = arith.andi %10, %12 : vector<8x256xi1>
    %14 = tpu.iota {dimensions = array<i32: 1>} : vector<8x64xi32>
    %c32_i32 = arith.constant 32 : i32
    %15 = vector.broadcast %c32_i32 : i32 to vector<8x64xi32>
    %16 = arith.cmpi slt, %14, %15 : vector<8x64xi32>
    %c0_9 = arith.constant 0 : index
    %c0_10 = arith.constant 0 : index
    %17 = vector.load %arg2[%c0_9, %c0_10] : memref<1x64xf32, #tpu.memory_space<vmem>>, vector<1x64xf32>
    %18 = vector.shape_cast %17 : vector<1x64xf32> to vector<1x64xf32>
    %19 = vector.broadcast %18 : vector<1x64xf32> to vector<8x64xf32>
    %c0_11 = arith.constant 0 : index
    %c0_12 = arith.constant 0 : index
    %20 = vector.load %arg3[%c0_11, %c0_12] : memref<1x64xf32, #tpu.memory_space<vmem>>, vector<1x64xf32>
    %21 = vector.shape_cast %20 : vector<1x64xf32> to vector<1x64xf32>
    %22 = vector.broadcast %21 : vector<1x64xf32> to vector<8x64xf32>
    %c0_13 = arith.constant 0 : index
    %c0_14 = arith.constant 0 : index
    %23 = vector.load %arg10[%c0_13, %c0_14] : memref<72x256xf32, #tpu.memory_space<vmem>>, vector<8x256xf32>
    %cst_15 = arith.constant dense<0.000000e+00> : vector<8x256xf32>
    %24 = tpu.matmul %19, %7, %cst_15 {dimension_numbers = #tpu.dot_dimension_numbers<[1], [0], [0], [1], [0, 0, 1, 1], [], []>} : vector<8x64xf32>, vector<64x256xf32>, vector<8x256xf32> -> vector<8x256xf32>
    %25 = arith.addf %24, %23 : vector<8x256xf32>
    %26 = arith.addf %25, %25 : vector<8x256xf32>
    %27 = arith.select %13, %26, %25 : vector<8x256xi1>, vector<8x256xf32>
    %28 = arith.negf %27 : vector<8x256xf32>
    %29 = math.exp %28 : vector<8x256xf32>
    %cst_16 = arith.constant 1.000000e+00 : f32
    %30 = vector.broadcast %cst_16 : f32 to vector<8x256xf32>
    %31 = arith.addf %30, %29 : vector<8x256xf32>
    %32 = arith.divf %30, %31 : vector<8x256xf32>
    %33 = arith.addf %32, %32 : vector<8x256xf32>
    %cst_17 = arith.constant 1.000000e+00 : f32
    %34 = vector.broadcast %cst_17 : f32 to vector<8x256xf32>
    %35 = arith.subf %33, %34 : vector<8x256xf32>
    %36 = arith.select %13, %35, %32 : vector<8x256xi1>, vector<8x256xf32>
    %37 = vector.extract_strided_slice %36 {offsets = [0, 0], sizes = [8, 64], strides = [1, 1]} : vector<8x256xf32> to vector<8x64xf32>
    %38 = vector.extract_strided_slice %36 {offsets = [0, 64], sizes = [8, 64], strides = [1, 1]} : vector<8x256xf32> to vector<8x64xf32>
    %39 = vector.extract_strided_slice %36 {offsets = [0, 128], sizes = [8, 64], strides = [1, 1]} : vector<8x256xf32> to vector<8x64xf32>
    %40 = vector.extract_strided_slice %36 {offsets = [0, 192], sizes = [8, 64], strides = [1, 1]} : vector<8x256xf32> to vector<8x64xf32>
    %41 = arith.mulf %38, %22 : vector<8x64xf32>
    %42 = arith.mulf %37, %39 : vector<8x64xf32>
    %43 = arith.addf %41, %42 : vector<8x64xf32>
    %44 = math.tanh %43 : vector<8x64xf32>
    %45 = arith.mulf %40, %44 : vector<8x64xf32>
    %46 = arith.select %16, %45, %19 : vector<8x64xi1>, vector<8x64xf32>
    %47 = arith.select %16, %43, %22 : vector<8x64xi1>, vector<8x64xf32>
    %c8 = arith.constant 8 : index
    %c0_18 = arith.constant 0 : index
    %48 = vector.load %arg10[%c8, %c0_18] : memref<72x256xf32, #tpu.memory_space<vmem>>, vector<8x256xf32>
    %cst_19 = arith.constant dense<0.000000e+00> : vector<8x256xf32>
    %49 = tpu.matmul %46, %7, %cst_19 {dimension_numbers = #tpu.dot_dimension_numbers<[1], [0], [0], [1], [0, 0, 1, 1], [], []>} : vector<8x64xf32>, vector<64x256xf32>, vector<8x256xf32> -> vector<8x256xf32>
    %50 = arith.addf %49, %48 : vector<8x256xf32>
    %51 = arith.addf %50, %50 : vector<8x256xf32>
    %52 = arith.select %13, %51, %50 : vector<8x256xi1>, vector<8x256xf32>
    %53 = arith.negf %52 : vector<8x256xf32>
    %54 = math.exp %53 : vector<8x256xf32>
    %cst_20 = arith.constant 1.000000e+00 : f32
    %55 = vector.broadcast %cst_20 : f32 to vector<8x256xf32>
    %56 = arith.addf %55, %54 : vector<8x256xf32>
    %57 = arith.divf %55, %56 : vector<8x256xf32>
    %58 = arith.addf %57, %57 : vector<8x256xf32>
    %cst_21 = arith.constant 1.000000e+00 : f32
    %59 = vector.broadcast %cst_21 : f32 to vector<8x256xf32>
    %60 = arith.subf %58, %59 : vector<8x256xf32>
    %61 = arith.select %13, %60, %57 : vector<8x256xi1>, vector<8x256xf32>
    %62 = vector.extract_strided_slice %61 {offsets = [0, 0], sizes = [8, 64], strides = [1, 1]} : vector<8x256xf32> to vector<8x64xf32>
    %63 = vector.extract_strided_slice %61 {offsets = [0, 64], sizes = [8, 64], strides = [1, 1]} : vector<8x256xf32> to vector<8x64xf32>
    %64 = vector.extract_strided_slice %61 {offsets = [0, 128], sizes = [8, 64], strides = [1, 1]} : vector<8x256xf32> to vector<8x64xf32>
    %65 = vector.extract_strided_slice %61 {offsets = [0, 192], sizes = [8, 64], strides = [1, 1]} : vector<8x256xf32> to vector<8x64xf32>
    %66 = arith.mulf %63, %47 : vector<8x64xf32>
    %67 = arith.mulf %62, %64 : vector<8x64xf32>
    %68 = arith.addf %66, %67 : vector<8x64xf32>
    %69 = math.tanh %68 : vector<8x64xf32>
    %70 = arith.mulf %65, %69 : vector<8x64xf32>
    %c16 = arith.constant 16 : index
    %c0_22 = arith.constant 0 : index
    %71 = vector.load %arg10[%c16, %c0_22] : memref<72x256xf32, #tpu.memory_space<vmem>>, vector<8x256xf32>
    %cst_23 = arith.constant dense<0.000000e+00> : vector<8x256xf32>
    %72 = tpu.matmul %70, %7, %cst_23 {dimension_numbers = #tpu.dot_dimension_numbers<[1], [0], [0], [1], [0, 0, 1, 1], [], []>} : vector<8x64xf32>, vector<64x256xf32>, vector<8x256xf32> -> vector<8x256xf32>
    %73 = arith.addf %72, %71 : vector<8x256xf32>
    %74 = arith.addf %73, %73 : vector<8x256xf32>
    %75 = arith.select %13, %74, %73 : vector<8x256xi1>, vector<8x256xf32>
    %76 = arith.negf %75 : vector<8x256xf32>
    %77 = math.exp %76 : vector<8x256xf32>
    %cst_24 = arith.constant 1.000000e+00 : f32
    %78 = vector.broadcast %cst_24 : f32 to vector<8x256xf32>
    %79 = arith.addf %78, %77 : vector<8x256xf32>
    %80 = arith.divf %78, %79 : vector<8x256xf32>
    %81 = arith.addf %80, %80 : vector<8x256xf32>
    %cst_25 = arith.constant 1.000000e+00 : f32
    %82 = vector.broadcast %cst_25 : f32 to vector<8x256xf32>
    %83 = arith.subf %81, %82 : vector<8x256xf32>
    %84 = arith.select %13, %83, %80 : vector<8x256xi1>, vector<8x256xf32>
    %85 = vector.extract_strided_slice %84 {offsets = [0, 0], sizes = [8, 64], strides = [1, 1]} : vector<8x256xf32> to vector<8x64xf32>
    %86 = vector.extract_strided_slice %84 {offsets = [0, 64], sizes = [8, 64], strides = [1, 1]} : vector<8x256xf32> to vector<8x64xf32>
    %87 = vector.extract_strided_slice %84 {offsets = [0, 128], sizes = [8, 64], strides = [1, 1]} : vector<8x256xf32> to vector<8x64xf32>
    %88 = vector.extract_strided_slice %84 {offsets = [0, 192], sizes = [8, 64], strides = [1, 1]} : vector<8x256xf32> to vector<8x64xf32>
    %89 = arith.mulf %86, %68 : vector<8x64xf32>
    %90 = arith.mulf %85, %87 : vector<8x64xf32>
    %91 = arith.addf %89, %90 : vector<8x64xf32>
    %92 = math.tanh %91 : vector<8x64xf32>
    %93 = arith.mulf %88, %92 : vector<8x64xf32>
    %c24 = arith.constant 24 : index
    %c0_26 = arith.constant 0 : index
    %94 = vector.load %arg10[%c24, %c0_26] : memref<72x256xf32, #tpu.memory_space<vmem>>, vector<8x256xf32>
    %cst_27 = arith.constant dense<0.000000e+00> : vector<8x256xf32>
    %95 = tpu.matmul %93, %7, %cst_27 {dimension_numbers = #tpu.dot_dimension_numbers<[1], [0], [0], [1], [0, 0, 1, 1], [], []>} : vector<8x64xf32>, vector<64x256xf32>, vector<8x256xf32> -> vector<8x256xf32>
    %96 = arith.addf %95, %94 : vector<8x256xf32>
    %97 = arith.addf %96, %96 : vector<8x256xf32>
    %98 = arith.select %13, %97, %96 : vector<8x256xi1>, vector<8x256xf32>
    %99 = arith.negf %98 : vector<8x256xf32>
    %100 = math.exp %99 : vector<8x256xf32>
    %cst_28 = arith.constant 1.000000e+00 : f32
    %101 = vector.broadcast %cst_28 : f32 to vector<8x256xf32>
    %102 = arith.addf %101, %100 : vector<8x256xf32>
    %103 = arith.divf %101, %102 : vector<8x256xf32>
    %104 = arith.addf %103, %103 : vector<8x256xf32>
    %cst_29 = arith.constant 1.000000e+00 : f32
    %105 = vector.broadcast %cst_29 : f32 to vector<8x256xf32>
    %106 = arith.subf %104, %105 : vector<8x256xf32>
    %107 = arith.select %13, %106, %103 : vector<8x256xi1>, vector<8x256xf32>
    %108 = vector.extract_strided_slice %107 {offsets = [0, 0], sizes = [8, 64], strides = [1, 1]} : vector<8x256xf32> to vector<8x64xf32>
    %109 = vector.extract_strided_slice %107 {offsets = [0, 64], sizes = [8, 64], strides = [1, 1]} : vector<8x256xf32> to vector<8x64xf32>
    %110 = vector.extract_strided_slice %107 {offsets = [0, 128], sizes = [8, 64], strides = [1, 1]} : vector<8x256xf32> to vector<8x64xf32>
    %111 = vector.extract_strided_slice %107 {offsets = [0, 192], sizes = [8, 64], strides = [1, 1]} : vector<8x256xf32> to vector<8x64xf32>
    %112 = arith.mulf %109, %91 : vector<8x64xf32>
    %113 = arith.mulf %108, %110 : vector<8x64xf32>
    %114 = arith.addf %112, %113 : vector<8x64xf32>
    %115 = math.tanh %114 : vector<8x64xf32>
    %116 = arith.mulf %111, %115 : vector<8x64xf32>
    %c32 = arith.constant 32 : index
    %c0_30 = arith.constant 0 : index
    %117 = vector.load %arg10[%c32, %c0_30] : memref<72x256xf32, #tpu.memory_space<vmem>>, vector<8x256xf32>
    %cst_31 = arith.constant dense<0.000000e+00> : vector<8x256xf32>
    %118 = tpu.matmul %116, %7, %cst_31 {dimension_numbers = #tpu.dot_dimension_numbers<[1], [0], [0], [1], [0, 0, 1, 1], [], []>} : vector<8x64xf32>, vector<64x256xf32>, vector<8x256xf32> -> vector<8x256xf32>
    %119 = arith.addf %118, %117 : vector<8x256xf32>
    %120 = arith.addf %119, %119 : vector<8x256xf32>
    %121 = arith.select %13, %120, %119 : vector<8x256xi1>, vector<8x256xf32>
    %122 = arith.negf %121 : vector<8x256xf32>
    %123 = math.exp %122 : vector<8x256xf32>
    %cst_32 = arith.constant 1.000000e+00 : f32
    %124 = vector.broadcast %cst_32 : f32 to vector<8x256xf32>
    %125 = arith.addf %124, %123 : vector<8x256xf32>
    %126 = arith.divf %124, %125 : vector<8x256xf32>
    %127 = arith.addf %126, %126 : vector<8x256xf32>
    %cst_33 = arith.constant 1.000000e+00 : f32
    %128 = vector.broadcast %cst_33 : f32 to vector<8x256xf32>
    %129 = arith.subf %127, %128 : vector<8x256xf32>
    %130 = arith.select %13, %129, %126 : vector<8x256xi1>, vector<8x256xf32>
    %131 = vector.extract_strided_slice %130 {offsets = [0, 0], sizes = [8, 64], strides = [1, 1]} : vector<8x256xf32> to vector<8x64xf32>
    %132 = vector.extract_strided_slice %130 {offsets = [0, 64], sizes = [8, 64], strides = [1, 1]} : vector<8x256xf32> to vector<8x64xf32>
    %133 = vector.extract_strided_slice %130 {offsets = [0, 128], sizes = [8, 64], strides = [1, 1]} : vector<8x256xf32> to vector<8x64xf32>
    %134 = vector.extract_strided_slice %130 {offsets = [0, 192], sizes = [8, 64], strides = [1, 1]} : vector<8x256xf32> to vector<8x64xf32>
    %135 = arith.mulf %132, %114 : vector<8x64xf32>
    %136 = arith.mulf %131, %133 : vector<8x64xf32>
    %137 = arith.addf %135, %136 : vector<8x64xf32>
    %138 = math.tanh %137 : vector<8x64xf32>
    %139 = arith.mulf %134, %138 : vector<8x64xf32>
    %c40 = arith.constant 40 : index
    %c0_34 = arith.constant 0 : index
    %140 = vector.load %arg10[%c40, %c0_34] : memref<72x256xf32, #tpu.memory_space<vmem>>, vector<8x256xf32>
    %cst_35 = arith.constant dense<0.000000e+00> : vector<8x256xf32>
    %141 = tpu.matmul %139, %7, %cst_35 {dimension_numbers = #tpu.dot_dimension_numbers<[1], [0], [0], [1], [0, 0, 1, 1], [], []>} : vector<8x64xf32>, vector<64x256xf32>, vector<8x256xf32> -> vector<8x256xf32>
    %142 = arith.addf %141, %140 : vector<8x256xf32>
    %143 = arith.addf %142, %142 : vector<8x256xf32>
    %144 = arith.select %13, %143, %142 : vector<8x256xi1>, vector<8x256xf32>
    %145 = arith.negf %144 : vector<8x256xf32>
    %146 = math.exp %145 : vector<8x256xf32>
    %cst_36 = arith.constant 1.000000e+00 : f32
    %147 = vector.broadcast %cst_36 : f32 to vector<8x256xf32>
    %148 = arith.addf %147, %146 : vector<8x256xf32>
    %149 = arith.divf %147, %148 : vector<8x256xf32>
    %150 = arith.addf %149, %149 : vector<8x256xf32>
    %cst_37 = arith.constant 1.000000e+00 : f32
    %151 = vector.broadcast %cst_37 : f32 to vector<8x256xf32>
    %152 = arith.subf %150, %151 : vector<8x256xf32>
    %153 = arith.select %13, %152, %149 : vector<8x256xi1>, vector<8x256xf32>
    %154 = vector.extract_strided_slice %153 {offsets = [0, 0], sizes = [8, 64], strides = [1, 1]} : vector<8x256xf32> to vector<8x64xf32>
    %155 = vector.extract_strided_slice %153 {offsets = [0, 64], sizes = [8, 64], strides = [1, 1]} : vector<8x256xf32> to vector<8x64xf32>
    %156 = vector.extract_strided_slice %153 {offsets = [0, 128], sizes = [8, 64], strides = [1, 1]} : vector<8x256xf32> to vector<8x64xf32>
    %157 = vector.extract_strided_slice %153 {offsets = [0, 192], sizes = [8, 64], strides = [1, 1]} : vector<8x256xf32> to vector<8x64xf32>
    %158 = arith.mulf %155, %137 : vector<8x64xf32>
    %159 = arith.mulf %154, %156 : vector<8x64xf32>
    %160 = arith.addf %158, %159 : vector<8x64xf32>
    %161 = math.tanh %160 : vector<8x64xf32>
    %162 = arith.mulf %157, %161 : vector<8x64xf32>
    %c48 = arith.constant 48 : index
    %c0_38 = arith.constant 0 : index
    %163 = vector.load %arg10[%c48, %c0_38] : memref<72x256xf32, #tpu.memory_space<vmem>>, vector<8x256xf32>
    %cst_39 = arith.constant dense<0.000000e+00> : vector<8x256xf32>
    %164 = tpu.matmul %162, %7, %cst_39 {dimension_numbers = #tpu.dot_dimension_numbers<[1], [0], [0], [1], [0, 0, 1, 1], [], []>} : vector<8x64xf32>, vector<64x256xf32>, vector<8x256xf32> -> vector<8x256xf32>
    %165 = arith.addf %164, %163 : vector<8x256xf32>
    %166 = arith.addf %165, %165 : vector<8x256xf32>
    %167 = arith.select %13, %166, %165 : vector<8x256xi1>, vector<8x256xf32>
    %168 = arith.negf %167 : vector<8x256xf32>
    %169 = math.exp %168 : vector<8x256xf32>
    %cst_40 = arith.constant 1.000000e+00 : f32
    %170 = vector.broadcast %cst_40 : f32 to vector<8x256xf32>
    %171 = arith.addf %170, %169 : vector<8x256xf32>
    %172 = arith.divf %170, %171 : vector<8x256xf32>
    %173 = arith.addf %172, %172 : vector<8x256xf32>
    %cst_41 = arith.constant 1.000000e+00 : f32
    %174 = vector.broadcast %cst_41 : f32 to vector<8x256xf32>
    %175 = arith.subf %173, %174 : vector<8x256xf32>
    %176 = arith.select %13, %175, %172 : vector<8x256xi1>, vector<8x256xf32>
    %177 = vector.extract_strided_slice %176 {offsets = [0, 0], sizes = [8, 64], strides = [1, 1]} : vector<8x256xf32> to vector<8x64xf32>
    %178 = vector.extract_strided_slice %176 {offsets = [0, 64], sizes = [8, 64], strides = [1, 1]} : vector<8x256xf32> to vector<8x64xf32>
    %179 = vector.extract_strided_slice %176 {offsets = [0, 128], sizes = [8, 64], strides = [1, 1]} : vector<8x256xf32> to vector<8x64xf32>
    %180 = vector.extract_strided_slice %176 {offsets = [0, 192], sizes = [8, 64], strides = [1, 1]} : vector<8x256xf32> to vector<8x64xf32>
    %181 = arith.mulf %178, %160 : vector<8x64xf32>
    %182 = arith.mulf %177, %179 : vector<8x64xf32>
    %183 = arith.addf %181, %182 : vector<8x64xf32>
    %184 = math.tanh %183 : vector<8x64xf32>
    %185 = arith.mulf %180, %184 : vector<8x64xf32>
    %c56 = arith.constant 56 : index
    %c0_42 = arith.constant 0 : index
    %186 = vector.load %arg10[%c56, %c0_42] : memref<72x256xf32, #tpu.memory_space<vmem>>, vector<8x256xf32>
    %cst_43 = arith.constant dense<0.000000e+00> : vector<8x256xf32>
    %187 = tpu.matmul %185, %7, %cst_43 {dimension_numbers = #tpu.dot_dimension_numbers<[1], [0], [0], [1], [0, 0, 1, 1], [], []>} : vector<8x64xf32>, vector<64x256xf32>, vector<8x256xf32> -> vector<8x256xf32>
    %188 = arith.addf %187, %186 : vector<8x256xf32>
    %189 = arith.addf %188, %188 : vector<8x256xf32>
    %190 = arith.select %13, %189, %188 : vector<8x256xi1>, vector<8x256xf32>
    %191 = arith.negf %190 : vector<8x256xf32>
    %192 = math.exp %191 : vector<8x256xf32>
    %cst_44 = arith.constant 1.000000e+00 : f32
    %193 = vector.broadcast %cst_44 : f32 to vector<8x256xf32>
    %194 = arith.addf %193, %192 : vector<8x256xf32>
    %195 = arith.divf %193, %194 : vector<8x256xf32>
    %196 = arith.addf %195, %195 : vector<8x256xf32>
    %cst_45 = arith.constant 1.000000e+00 : f32
    %197 = vector.broadcast %cst_45 : f32 to vector<8x256xf32>
    %198 = arith.subf %196, %197 : vector<8x256xf32>
    %199 = arith.select %13, %198, %195 : vector<8x256xi1>, vector<8x256xf32>
    %200 = vector.extract_strided_slice %199 {offsets = [0, 0], sizes = [8, 64], strides = [1, 1]} : vector<8x256xf32> to vector<8x64xf32>
    %201 = vector.extract_strided_slice %199 {offsets = [0, 64], sizes = [8, 64], strides = [1, 1]} : vector<8x256xf32> to vector<8x64xf32>
    %202 = vector.extract_strided_slice %199 {offsets = [0, 128], sizes = [8, 64], strides = [1, 1]} : vector<8x256xf32> to vector<8x64xf32>
    %203 = vector.extract_strided_slice %199 {offsets = [0, 192], sizes = [8, 64], strides = [1, 1]} : vector<8x256xf32> to vector<8x64xf32>
    %204 = arith.mulf %201, %183 : vector<8x64xf32>
    %205 = arith.mulf %200, %202 : vector<8x64xf32>
    %206 = arith.addf %204, %205 : vector<8x64xf32>
    %207 = math.tanh %206 : vector<8x64xf32>
    %208 = arith.mulf %203, %207 : vector<8x64xf32>
    %c64 = arith.constant 64 : index
    %c0_46 = arith.constant 0 : index
    %209 = vector.load %arg10[%c64, %c0_46] : memref<72x256xf32, #tpu.memory_space<vmem>>, vector<8x256xf32>
    %cst_47 = arith.constant dense<0.000000e+00> : vector<8x256xf32>
    %210 = tpu.matmul %208, %7, %cst_47 {dimension_numbers = #tpu.dot_dimension_numbers<[1], [0], [0], [1], [0, 0, 1, 1], [], []>} : vector<8x64xf32>, vector<64x256xf32>, vector<8x256xf32> -> vector<8x256xf32>
    %211 = arith.addf %210, %209 : vector<8x256xf32>
    %212 = arith.addf %211, %211 : vector<8x256xf32>
    %213 = arith.select %13, %212, %211 : vector<8x256xi1>, vector<8x256xf32>
    %214 = arith.negf %213 : vector<8x256xf32>
    %215 = math.exp %214 : vector<8x256xf32>
    %cst_48 = arith.constant 1.000000e+00 : f32
    %216 = vector.broadcast %cst_48 : f32 to vector<8x256xf32>
    %217 = arith.addf %216, %215 : vector<8x256xf32>
    %218 = arith.divf %216, %217 : vector<8x256xf32>
    %219 = arith.addf %218, %218 : vector<8x256xf32>
    %cst_49 = arith.constant 1.000000e+00 : f32
    %220 = vector.broadcast %cst_49 : f32 to vector<8x256xf32>
    %221 = arith.subf %219, %220 : vector<8x256xf32>
    %222 = arith.select %13, %221, %218 : vector<8x256xi1>, vector<8x256xf32>
    %223 = vector.extract_strided_slice %222 {offsets = [0, 0], sizes = [8, 64], strides = [1, 1]} : vector<8x256xf32> to vector<8x64xf32>
    %224 = vector.extract_strided_slice %222 {offsets = [0, 64], sizes = [8, 64], strides = [1, 1]} : vector<8x256xf32> to vector<8x64xf32>
    %225 = vector.extract_strided_slice %222 {offsets = [0, 128], sizes = [8, 64], strides = [1, 1]} : vector<8x256xf32> to vector<8x64xf32>
    %226 = vector.extract_strided_slice %222 {offsets = [0, 192], sizes = [8, 64], strides = [1, 1]} : vector<8x256xf32> to vector<8x64xf32>
    %227 = arith.mulf %224, %206 : vector<8x64xf32>
    %228 = arith.mulf %223, %225 : vector<8x64xf32>
    %229 = arith.addf %227, %228 : vector<8x64xf32>
    %230 = math.tanh %229 : vector<8x64xf32>
    %231 = arith.mulf %226, %230 : vector<8x64xf32>
    %232 = arith.select %16, %208, %231 : vector<8x64xi1>, vector<8x64xf32>
    %c0_50 = arith.constant 0 : index
    %c0_51 = arith.constant 0 : index
    %233 = vector.load %arg7[%c0_50, %c0_51] : memref<64x4xf32, #tpu.memory_space<vmem>>, vector<64x4xf32>
    %cst_52 = arith.constant dense<0.000000e+00> : vector<8x4xf32>
    %234 = tpu.matmul %232, %233, %cst_52 {dimension_numbers = #tpu.dot_dimension_numbers<[1], [0], [0], [1], [0, 0, 1, 1], [], []>} : vector<8x64xf32>, vector<64x4xf32>, vector<8x4xf32> -> vector<8x4xf32>
    %c0_53 = arith.constant 0 : index
    %c0_54 = arith.constant 0 : index
    %235 = vector.load %arg8[%c0_53, %c0_54] : memref<1x4xf32, #tpu.memory_space<vmem>>, vector<1x4xf32>
    %236 = vector.broadcast %235 : vector<1x4xf32> to vector<8x4xf32>
    %237 = arith.addf %234, %236 : vector<8x4xf32>
    %c0_55 = arith.constant 0 : index
    %c0_56 = arith.constant 0 : index
    %238 = vector.load %arg9[%c0_55, %c0_56] : memref<8x4xf32, #tpu.memory_space<vmem>>, vector<8x4xf32>
    tpu.vector_store %arg9[%c0_55, %c0_56], %237 {strides = array<i32>} : memref<8x4xf32, #tpu.memory_space<vmem>>, vector<8x4xf32>,
    return
  }
  func.func @transform_0(%arg0: i32) -> (i32, i32) {
    %c0_i32 = arith.constant 0 : i32
    %c0_i32_0 = arith.constant 0 : i32
    %c0_i32_1 = arith.constant 0 : i32
    return %c0_i32, %c0_i32_0 : i32, i32
  }
  func.func @transform_1(%arg0: i32) -> (i32, i32) {
    %c0_i32 = arith.constant 0 : i32
    %c0_i32_0 = arith.constant 0 : i32
    %c0_i32_1 = arith.constant 0 : i32
    return %c0_i32, %c0_i32_0 : i32, i32
  }
  func.func @transform_2(%arg0: i32) -> (i32, i32) {
    %c0_i32 = arith.constant 0 : i32
    %c0_i32_0 = arith.constant 0 : i32
    %c0_i32_1 = arith.constant 0 : i32
    return %c0_i32, %c0_i32_0 : i32, i32
  }
  func.func @transform_3(%arg0: i32) -> (i32, i32) {
    %c0_i32 = arith.constant 0 : i32
    %c0_i32_0 = arith.constant 0 : i32
    %c0_i32_1 = arith.constant 0 : i32
    return %c0_i32, %c0_i32_0 : i32, i32
  }
  func.func @transform_4(%arg0: i32) -> (i32, i32) {
    %c0_i32 = arith.constant 0 : i32
    %c0_i32_0 = arith.constant 0 : i32
    %c0_i32_1 = arith.constant 0 : i32
    return %c0_i32, %c0_i32_0 : i32, i32
  }
  func.func @transform_5(%arg0: i32) -> (i32, i32) {
    %c0_i32 = arith.constant 0 : i32
    %c0_i32_0 = arith.constant 0 : i32
    %c0_i32_1 = arith.constant 0 : i32
    return %c0_i32, %c0_i32_0 : i32, i32
  }
  func.func @transform_6(%arg0: i32) -> (i32, i32) {
    %c0_i32 = arith.constant 0 : i32
    %c0_i32_0 = arith.constant 0 : i32
    %c0_i32_1 = arith.constant 0 : i32
    return %c0_i32, %c0_i32_0 : i32, i32
  }
  func.func @transform_7(%arg0: i32) -> (i32, i32) {
    %c0_i32 = arith.constant 0 : i32
    %c0_i32_0 = arith.constant 0 : i32
    %c0_i32_1 = arith.constant 0 : i32
    return %c0_i32, %c0_i32_0 : i32, i32
  }
  func.func @transform_8(%arg0: i32) -> (i32, i32) {
    %c0_i32 = arith.constant 0 : i32
    %c0_i32_0 = arith.constant 0 : i32
    %c0_i32_1 = arith.constant 0 : i32
    return %c0_i32, %c0_i32_0 : i32, i32
  }
}

</mosaic_0001>

<bundles_post_ra>
// kernel: tpu_custom_call.1
= control target key start
LH: loop header
LB: loop body
LE: loop exit
PB: predicated region body
PF: predicated region fallthrough
CT: control target
= control target key end

     0   :  { %v1538_v3 = vmov 0.0   ;;  %vm81_vm0 = vcmask 1043456   ;;  %vm53_vm1 = vcmask 31744   ;;  %s1539_s11 = smov 64   ;;  %vm265_vm2 = vcmask 523264   ;;  %s2066_s5 = inlined_call_operand.vmem [shape: f32[64,256], index: 5, kind: input, shape index: {}]   ;;  %s2067_s3 = inlined_call_operand.vmem [shape: f32[4,256], index: 3, kind: input, shape index: {}]   ;;  %s2068_s0 = inlined_call_operand.vmem [shape: f32[72,4], index: 0, kind: input, shape index: {}]   ;;  %s2069_s2 = inlined_call_operand.vmem [shape: f32[1,64], index: 2, kind: input, shape index: {}]   ;;  %s2070_s1 = inlined_call_operand.vmem [shape: f32[1,64], index: 1, kind: input, shape index: {}]   ;;  %s2071_s4 = inlined_call_operand.vmem [shape: f32[1,256], index: 4, kind: input, shape index: {}]   ;;  %s2072_s6 = inlined_call_operand.vmem [shape: f32[64,4], index: 6, kind: input, shape index: {}]   ;;  %s2073_s7 = inlined_call_operand.vmem [shape: f32[1,4], index: 7, kind: input, shape index: {}]   ;;  %s2074_s8 = inlined_call_operand.vmem [shape: f32[8,4], index: 8, kind: output, shape index: {}]  }
   0x1   :  { %v1589_v0 = vld [vmem:[%s2066_s5 + $0x78] sm:$0xff]  ;;  %v1594_v1 = vld [vmem:[%s2066_s5 + $0x70] sm:$0xff]  ;;  %v1599_v2 = vld [vmem:[%s2066_s5 + $0x68] sm:$0xff]  ;;  %150 = vmatprep.mubr.f32.mxu0 %v1538_v3  ;;  %332 = vmatprep.mubr.f32.mxu1 %v1538_v3  ;;  %v41_v22 = vlaneseq  ;;  %vm1540_vm5 = vmmov 0  }
   0x2   :  { %284 = vmatprep.subr.mxu1 %v1589_v0  ;;  %v1607_v4 = vld [vmem:[%s2066_s5 + $0x60] sm:$0xff]  ;;  %v1613_v5 = vld [vmem:[%s2066_s5 + $0x58] sm:$0xff]  ;;  %v1619_v6 = vld [vmem:[%s2066_s5 + $0x50] sm:$0xff] }
   0x3   :  { %285 = vmatpush1.msra.mxu1 %v1594_v1  ;;  %v38_v7 = vld [vmem:[%s2067_s3] sm:$0xff]  ;;  %v1628_v8 = vld [vmem:[%s2066_s5 + $0x48] sm:$0xff]  ;;  %v1643_v12 = vld [vmem:[%s2066_s5 + $0x38] sm:$0xff]  ;;  %v42_v23 = vshrl.u32 %v41_v22, 7  ;;  %v1746_v29 = vand.u32 127, %v41_v22 }
   0x4   :  { %286 = vmatprep.subr.mxu1 %v1599_v2  ;;  %v52_v9 = vcombine.high %v38_v7, %v38_v7  ;;  %v1634_v10 = vld [vmem:[%s2066_s5 + $0x40] sm:$0xff]  ;;  %v1654_v14 = vld [vmem:[%s2066_s5 + $0x30] sm:$0xff]  ;;  %v1660_v15 = vld [vmem:[%s2066_s5 + $0x28] sm:$0xff] }
   0x5   :  { %287 = vmatpush1.msra.mxu1 %v1607_v4  ;;  %v29_v11 = vld [vmem:[%s2068_s0] sm:$0xff]  ;;  %v1675_v17 = vld [vmem:[%s2066_s5 + $0x18] sm:$0xff]  ;;  %v1682_v18 = vld [vmem:[%s2066_s5 + $0x10] sm:$0xff]  ;;  %v43_v24 = vsub.s32 0, %v42_v23  ;;  %v47_v26 = vsub.s32 1, %v42_v23  ;;  %v1752_v33 = vadd.s32 128, %v1746_v29 }
   0x6   :  { %288 = vmatprep.subr.mxu1 %v1613_v5  ;;  %1356 = vmatprep.subr.msk.mxu0 %vm81_vm0, %v52_v9  ;;  %v1648_v13 = vld [vmem:[%s2069_s2] ss:$0 sm:$0xff]  ;;  %v1689_v19 = vld [vmem:[%s2066_s5 + $0x8] sm:$0xff]  ;;  %vm248_vm4 = vcmp.lt.s32.totalorder %v1746_v29, 32 }
   0x7   :  { %289 = vmatpush1.msra.mxu1 %v1619_v6  ;;  %1357 = vmatpush1.msk.msra.mxu0 %vm81_vm0, %v38_v7  ;;  %v1667_v16 = vld [vmem:[%s2066_s5 + $0x20] sm:$0xff]  ;;  %vm245_vm3 = vcmp.lt.s32.totalorder %v1752_v33, 192  ;;  %v30_v53 = vld [vmem:[%s2068_s0 + $0x8] sm:$0xff] }
   0x8   :  { %290 = vmatprep.subr.mxu1 %v1628_v8  ;;  %1358 = vmatmul.mubr.msk.f32.vlgmr.msra.gmra.mxu0 %vm53_vm1, %v29_v11  ;;  %v1696_v20 = vld [vmem:[%s2066_s5] sm:$0xff] }
   0x9   :  { %291 = vmatpush1.msra.mxu1 %v1634_v10  ;;  %361 = vrot.lane.b32.xlu0 %v1648_v13, %s1539_s11  ;;  %v1703_v21 = vld [vmem:[%s2070_s1] ss:$0 sm:$0xff] }
   0xa   :  { %292 = vmatprep.subr.mxu1 %v1643_v12  ;;  %156 = vmatprep.mubr.f32.mxu0 %v1538_v3  ;;  %v39_v25 = vld [vmem:[%s2071_s4] sm:$0x3] }
   0xb   :  { %293 = vmatpush1.msra.mxu1 %v1654_v14  ;;  %517 = vmatprep.subr.mxu0 %v1589_v0  ;;  %v1744_v28 = vrot.slane %v39_v25, %v43_v24  ;;  %v1748_v30 = vrot.slane %v39_v25, %v47_v26  ;;  %v1267_v33 = vld [vmem:[%s2072_s6 + $0x20] sm:$0xff] }
   0xc   :  { %294 = vmatprep.subr.mxu1 %v1660_v15  ;;  %518 = vmatpush1.msra.mxu0 %v1594_v1 }
   0xd   :  { %295 = vmatpush1.msra.mxu1 %v1667_v16  ;;  %519 = vmatprep.subr.mxu0 %v1599_v2 }
   0xe   :  { %296 = vmatprep.subr.mxu1 %v1675_v17  ;;  %520 = vmatpush1.msra.mxu0 %v1607_v4 }
   0xf   :  { %297 = vmatpush1.msra.mxu1 %v1682_v18  ;;  %521 = vmatprep.subr.mxu0 %v1613_v5 }
  0x10   :  { %298 = vmatprep.subr.mxu1 %v1689_v19  ;;  %522 = vmatpush1.msra.mxu0 %v1619_v6 }
  0x11   :  { %299 = vmatpush1.msra.mxu1 %v1696_v20  ;;  %523 = vmatprep.subr.mxu0 %v1628_v8 }
  0x12   :  { %1369 = vmatmul.mubr.msk.f32.vlgmr.msra.gmra.mxu1 %vm265_vm2, %v1703_v21  ;;  %404 = vmatprep.subr.mxu1 %v1589_v0 }
  0x13   :  { %405 = vmatpush1.msra.mxu1 %v1594_v1  ;;  %452 = vmatprep.mubr.f32.mxu1 %v1538_v3 }
  0x14   :  { %406 = vmatprep.subr.mxu1 %v1599_v2  ;;  %524 = vmatpush1.msra.mxu0 %v1634_v10 }
  0x15   :  { %407 = vmatpush1.msra.mxu1 %v1607_v4  ;;  %525 = vmatprep.subr.mxu0 %v1643_v12 }
  0x16   :  { %408 = vmatprep.subr.mxu1 %v1613_v5  ;;  %526 = vmatpush1.msra.mxu0 %v1654_v14 }
  0x17   :  { %409 = vmatpush1.msra.mxu1 %v1619_v6  ;;  %527 = vmatprep.subr.mxu0 %v1660_v15 }
  0x18   :  { %410 = vmatprep.subr.mxu1 %v1628_v8  ;;  %528 = vmatpush1.msra.mxu0 %v1667_v16 }
  0x19   :  { %411 = vmatpush1.msra.mxu1 %v1634_v10  ;;  %529 = vmatprep.subr.mxu0 %v1675_v17 }
  0x1a   :  { %412 = vmatprep.subr.mxu1 %v1643_v12  ;;  %530 = vmatpush1.msra.mxu0 %v1682_v18 }
  0x1b   :  { %413 = vmatpush1.msra.mxu1 %v1654_v14  ;;  %531 = vmatprep.subr.mxu0 %v1689_v19 }
  0x1c   :  { %414 = vmatprep.subr.mxu1 %v1660_v15  ;;  %532 = vmatpush1.msra.mxu0 %v1696_v20 }
  0x1d   :  { %415 = vmatpush1.msra.mxu1 %v1667_v16  ;;  %735 = vmatprep.subr.mxu0 %v1589_v0 }
  0x1e   :  { %416 = vmatprep.subr.mxu1 %v1675_v17  ;;  %1359 = vmatmul.mubr.msk.f32.gmra.mxu0 %vm53_vm1, %v30_v53 }
  0x1f   :  { %417 = vmatpush1.msra.mxu1 %v1682_v18  ;;  %162 = vmatprep.mubr.f32.mxu0 %v1538_v3 }
  0x20   :  { %418 = vmatprep.subr.mxu1 %v1689_v19 }
  0x21   :  { %419 = vmatpush1.msra.mxu1 %v1696_v20 }
  0x22   :  { %626 = vmatprep.subr.mxu1 %v1589_v0 }
  0x7b   :  { %v362_v54 = vpop.permute.xlu0 %361 }
  0xc8   :  { %v152_v27 = vpop.f32.mrf.mxu0 }
  0xc9   :  { %v153_v32 = vadd.f32 %v152_v27, %v1744_v28 }
  0xca   :  { %v154_v31 = vpop.f32.mrf.mxu0 }
  0xcb   :  { %v155_v35 = vadd.f32 %v154_v31, %v1748_v30 }
  0xd2   :  { %v334_v34 = vpop.f32.mrf.mxu1 }
  0xd3   :  { %v335_v37 = vadd.f32 %v334_v34, %v153_v32 }
  0xd4   :  { %v336_v36 = vpop.f32.mrf.mxu1 }
  0xd5   :  { %v337_v38 = vadd.f32 %v336_v36, %v155_v35  ;;  %v1370_v40 = vmul.f32 -1.442695, %v335_v37 }
  0xd7   :  { %v340_v39 = vadd.f32 %v337_v38, %v337_v38 }
  0xd9   :  { %v342_v41 = vsel %vm245_vm3, %v340_v39, %v337_v38 }
  0xda   :  { %v1371_v42 = vmul.f32 -1.442695, %v342_v41 }
  0xdc   :  { %1448 = vpow2.f32 %v1371_v42 }
  0xdd   :  { %1450 = vpow2.f32 %v1370_v40 }
  0xde   :  { %v158_v7 = vpop.f32.mrf.mxu0 }
  0xdf   :  { %v159_v11 = vadd.f32 %v158_v7, %v1744_v28 }
  0xe0   :  { %v160_v9 = vpop.f32.mrf.mxu0 }
  0xe9   :  { %v1449_v43 = vpop.eup %1448 }
  0xea   :  { %v1451_v44 = vpop.eup %1450  ;;  %v350_v45 = vadd.f32 1.0, %v1449_v43  ;;  %v31_v43 = vld [vmem:[%s2068_s0 + $0x10] sm:$0xff] }
  0xeb   :  { %v349_v46 = vadd.f32 1.0, %v1451_v44  ;;  %1360 = vmatmul.mubr.msk.f32.gmra.mxu0 %vm53_vm1, %v31_v43  ;;  %v32_v44 = vld [vmem:[%s2068_s0 + $0x18] sm:$0xff] }
  0xec   :  { %1452 = vrcp.f32 %v350_v45  ;;  %168 = vmatprep.mubr.f32.mxu0 %v1538_v3  ;;  %v33_v45 = vld [vmem:[%s2068_s0 + $0x20] sm:$0xff] }
  0xed   :  { %1454 = vrcp.f32 %v349_v46  ;;  %v34_v46 = vld [vmem:[%s2068_s0 + $0x28] sm:$0xff] }
  0xef   :  { %1361 = vmatmul.mubr.msk.f32.gmra.mxu0 %vm53_vm1, %v32_v44 }
  0xf0   :  { %174 = vmatprep.mubr.f32.mxu0 %v1538_v3 }
  0xf3   :  { %1362 = vmatmul.mubr.msk.f32.gmra.mxu0 %vm53_vm1, %v33_v45 }
  0xf4   :  { %180 = vmatprep.mubr.f32.mxu0 %v1538_v3 }
  0xf7   :  { %1363 = vmatmul.mubr.msk.f32.gmra.mxu0 %vm53_vm1, %v34_v46 }
  0xf8   :  { %186 = vmatprep.mubr.f32.mxu0 %v1538_v3 }
  0xf9   :  { %v1453_v47 = vpop.eup %1452 }
  0xfa   :  { %v356_v48 = vadd.f32 %v1453_v47, %v1453_v47  ;;  %v1455_v50 = vpop.eup %1454 }
  0xfb   :  { %v364_v55 = vmul.f32 %v1455_v50, %v362_v54 }
  0xfc   :  { %v1373_v49 = vadd.f32 -1.0, %v356_v48  ;;  %v36_v48 = vld [vmem:[%s2068_s0 + $0x38] sm:$0xff] }
  0xfe   :  { %v360_v51 = vsel %vm245_vm3, %v1373_v49, %v1453_v47  ;;  %v35_v47 = vld [vmem:[%s2068_s0 + $0x30] sm:$0xff]  ;;  %v37_v49 = vld [vmem:[%s2068_s0 + $0x40] sm:$0xff] }
  0xff   :  { %v365_v52 = vmul.f32 %v1455_v50, %v360_v51  ;;  %1364 = vmatmul.mubr.msk.f32.gmra.mxu0 %vm53_vm1, %v35_v47 }
 0x100   :  { %192 = vmatprep.mubr.f32.mxu0 %v1538_v3 }
 0x101   :  { %367 = vrot.lane.b32.xlu0 %v365_v52, %s1539_s11 }
 0x103   :  { %1365 = vmatmul.mubr.msk.f32.gmra.mxu0 %vm53_vm1, %v36_v48 }
 0x104   :  { %198 = vmatprep.mubr.f32.mxu0 %v1538_v3 }
 0x107   :  { %1366 = vmatmul.mubr.msk.f32.gmra.mxu0 %vm53_vm1, %v37_v49 }
 0x108   :  { %565 = vmatprep.mubr.f32.mxu0 %v1538_v3 }
 0x173   :  { %v368_v56 = vpop.permute.xlu0 %367 }
 0x174   :  { %v370_v57 = vadd.f32 %v368_v56, %v364_v55 }
 0x176   :  { %1456 = vtanh.f32 %v370_v57 }
 0x183   :  { %v1457_v58 = vpop.eup %1456 }
 0x184   :  { %v372_v59 = vmul.f32 %v1457_v58, %v360_v51 }
 0x186   :  { %374 = vrot.lane.b32.xlu1 %v372_v59, %s1539_s11 }
 0x18a   :  { %379 = vrot.lane.b32.xlu1 %v370_v57, %s1539_s11 }
 0x1ab   :  { %v164_v57 = vpop.f32.mrf.mxu0 }
 0x1ad   :  { %v166_v58 = vpop.f32.mrf.mxu0 }
 0x1af   :  { %v1858_v59 = vpop.f32.mrf.mxu0 }
 0x1f8   :  { %v375_v60 = vpop.permute.xlu1 %374 }
 0x1f9   :  { %v377_v61 = vsel %vm248_vm4, %v375_v60, %v1703_v21  ;;  %v161_v21 = vadd.f32 %v160_v9, %v1748_v30  ;;  %v1860_v60 = vpop.f32.mrf.mxu0 }
 0x1fa   :  { %1374 = vmatmul.mubr.msk.f32.vlgmr.msra.gmra.mxu1 %vm265_vm2, %v377_v61 }
 0x1fb   :  { %627 = vmatpush1.msra.mxu1 %v1594_v1  ;;  %674 = vmatprep.mubr.f32.mxu1 %v1538_v3  ;;  %v1862_v61 = vpop.f32.mrf.mxu0 }
 0x1fc   :  { %v380_v62 = vpop.permute.xlu1 %379  ;;  %628 = vmatprep.subr.mxu1 %v1599_v2 }
 0x1fd   :  { %v382_v63 = vsel %vm248_vm4, %v380_v62, %v1648_v13  ;;  %629 = vmatpush1.msra.mxu1 %v1607_v4  ;;  %v1864_v62 = vpop.f32.mrf.mxu0 }
 0x1fe   :  { %482 = vrot.lane.b32.xlu0 %v382_v63, %s1539_s11  ;;  %630 = vmatprep.subr.mxu1 %v1613_v5 }
 0x1ff   :  { %631 = vmatpush1.msra.mxu1 %v1619_v6  ;;  %v1866_v63 = vpop.f32.mrf.mxu0 }
 0x200   :  { %632 = vmatprep.subr.mxu1 %v1628_v8 }
 0x201   :  { %633 = vmatpush1.msra.mxu1 %v1634_v10  ;;  %v1868_v7 = vpop.f32.mrf.mxu0 }
 0x202   :  { %634 = vmatprep.subr.mxu1 %v1643_v12 }
 0x203   :  { %635 = vmatpush1.msra.mxu1 %v1654_v14  ;;  %v1870_v9 = vpop.f32.mrf.mxu0 }
 0x204   :  { %636 = vmatprep.subr.mxu1 %v1660_v15 }
 0x205   :  { %637 = vmatpush1.msra.mxu1 %v1667_v16 }
 0x206   :  { %638 = vmatprep.subr.mxu1 %v1675_v17 }
 0x207   :  { %639 = vmatpush1.msra.mxu1 %v1682_v18 }
 0x208   :  { %640 = vmatprep.subr.mxu1 %v1689_v19 }
 0x209   :  { %641 = vmatpush1.msra.mxu1 %v1696_v20 }
 0x20a   :  { %844 = vmatprep.subr.mxu1 %v1589_v0 }
 0x270   :  { %v483_v50 = vpop.permute.xlu0 %482 }
 0x2ba   :  { %v454_v13 = vpop.f32.mrf.mxu1 }
 0x2bb   :  { %v455_v23 = vadd.f32 %v454_v13, %v159_v11  ;;  %v1872_v11 = vpop.f32.mrf.mxu0 }
 0x2bc   :  { %v456_v22 = vpop.f32.mrf.mxu1 }
 0x2bd   :  { %v457_v24 = vadd.f32 %v456_v22, %v161_v21  ;;  %v1375_v26 = vmul.f32 -1.442695, %v455_v23  ;;  %v1874_v13 = vpop.f32.mrf.mxu0 }
 0x2bf   :  { %v460_v25 = vadd.f32 %v457_v24, %v457_v24  ;;  %v1876_v21 = vpop.f32.mrf.mxu0 }
 0x2c1   :  { %v462_v27 = vsel %vm245_vm3, %v460_v25, %v457_v24  ;;  %v1878_v22 = vpop.f32.mrf.mxu0  ;;  %v165_v25 = vadd.f32 %v164_v57, %v1744_v28 }
 0x2c2   :  { %v1376_v31 = vmul.f32 -1.442695, %v462_v27 }
 0x2c3   :  { %v1880_v23 = vpop.f32.mrf.mxu0 }
 0x2c4   :  { %1458 = vpow2.f32 %v1376_v31 }
 0x2c5   :  { %1460 = vpow2.f32 %v1375_v26  ;;  %v167_v26 = vadd.f32 %v166_v58, %v1748_v30 }
 0x2d1   :  { %v1459_v32 = vpop.eup %1458 }
 0x2d2   :  { %v1461_v34 = vpop.eup %1460  ;;  %v470_v35 = vadd.f32 1.0, %v1459_v32 }
 0x2d3   :  { %v469_v36 = vadd.f32 1.0, %v1461_v34 }
 0x2d4   :  { %1462 = vrcp.f32 %v470_v35 }
 0x2d5   :  { %1464 = vrcp.f32 %v469_v36 }
 0x2e1   :  { %v1463_v37 = vpop.eup %1462 }
 0x2e2   :  { %v476_v38 = vadd.f32 %v1463_v37, %v1463_v37  ;;  %v1465_v40 = vpop.eup %1464 }
 0x2e3   :  { %v485_v51 = vmul.f32 %v1465_v40, %v483_v50 }
 0x2e4   :  { %v1378_v39 = vadd.f32 -1.0, %v476_v38 }
 0x2e6   :  { %v480_v41 = vsel %vm245_vm3, %v1378_v39, %v1463_v37 }
 0x2e7   :  { %v486_v42 = vmul.f32 %v1465_v40, %v480_v41 }
 0x2e9   :  { %488 = vrot.lane.b32.xlu1 %v486_v42, %s1539_s11 }
 0x35b   :  { %v489_v52 = vpop.permute.xlu1 %488 }
 0x35c   :  { %v1836_v53 = vadd.f32 %v489_v52, %v485_v51 }
 0x35e   :  { %1466 = vtanh.f32 %v1836_v53 }
 0x36b   :  { %v1467_v54 = vpop.eup %1466 }
 0x36c   :  { %v493_v55 = vmul.f32 %v1467_v54, %v480_v41 }
 0x36e   :  { %497 = vrot.lane.b32.xlu0 %v493_v55, %s1539_s11  ;;  %v171_v55 = vadd.f32 %v1858_v59, %v1744_v28 }
 0x3e0   :  { %v498_v56 = vpop.permute.xlu0 %497 }
 0x3e1   :  { %1379 = vmatmul.mubr.msk.f32.vlgmr.msra.gmra.mxu0 %vm265_vm2, %v498_v56  ;;  %v173_v56 = vadd.f32 %v1860_v60, %v1748_v30 }
 0x3e2   :  { %736 = vmatpush1.msra.mxu0 %v1594_v1  ;;  %783 = vmatprep.mubr.f32.mxu0 %v1538_v3 }
 0x3e3   :  { %737 = vmatprep.subr.mxu0 %v1599_v2 }
 0x3e4   :  { %738 = vmatpush1.msra.mxu0 %v1607_v4 }
 0x3e5   :  { %739 = vmatprep.subr.mxu0 %v1613_v5 }
 0x3e6   :  { %740 = vmatpush1.msra.mxu0 %v1619_v6 }
 0x3e7   :  { %741 = vmatprep.subr.mxu0 %v1628_v8 }
 0x3e8   :  { %742 = vmatpush1.msra.mxu0 %v1634_v10 }
 0x3e9   :  { %743 = vmatprep.subr.mxu0 %v1643_v12 }
 0x3ea   :  { %744 = vmatpush1.msra.mxu0 %v1654_v14 }
 0x3eb   :  { %745 = vmatprep.subr.mxu0 %v1660_v15 }
 0x3ec   :  { %746 = vmatpush1.msra.mxu0 %v1667_v16 }
 0x3ed   :  { %747 = vmatprep.subr.mxu0 %v1675_v17 }
 0x3ee   :  { %748 = vmatpush1.msra.mxu0 %v1682_v18 }
 0x3ef   :  { %749 = vmatprep.subr.mxu0 %v1689_v19 }
 0x3f0   :  { %750 = vmatpush1.msra.mxu0 %v1696_v20 }
 0x3f1   :  { %953 = vmatprep.subr.mxu0 %v1589_v0 }
 0x4a1   :  { %v567_v24 = vpop.f32.mrf.mxu0 }
 0x4a2   :  { %v568_v31 = vadd.f32 %v567_v24, %v165_v25 }
 0x4a3   :  { %v569_v27 = vpop.f32.mrf.mxu0 }
 0x4a4   :  { %v570_v32 = vadd.f32 %v569_v27, %v167_v26  ;;  %v1380_v35 = vmul.f32 -1.442695, %v568_v31 }
 0x4a6   :  { %v573_v34 = vadd.f32 %v570_v32, %v570_v32 }
 0x4a8   :  { %v575_v36 = vsel %vm245_vm3, %v573_v34, %v570_v32 }
 0x4a9   :  { %v1381_v37 = vmul.f32 -1.442695, %v575_v36 }
 0x4ab   :  { %1468 = vpow2.f32 %v1381_v37 }
 0x4ac   :  { %1470 = vpow2.f32 %v1380_v35 }
 0x4b8   :  { %v1469_v38 = vpop.eup %1468 }
 0x4b9   :  { %v1471_v39 = vpop.eup %1470  ;;  %v583_v40 = vadd.f32 1.0, %v1469_v38 }
 0x4ba   :  { %v582_v41 = vadd.f32 1.0, %v1471_v39 }
 0x4bb   :  { %1472 = vrcp.f32 %v583_v40 }
 0x4bc   :  { %1474 = vrcp.f32 %v582_v41 }
 0x4c8   :  { %v1473_v42 = vpop.eup %1472 }
 0x4c9   :  { %v589_v43 = vadd.f32 %v1473_v42, %v1473_v42  ;;  %v1475_v45 = vpop.eup %1474 }
 0x4ca   :  { %v594_v48 = vmul.f32 %v1475_v45, %v1836_v53 }
 0x4cb   :  { %v1383_v44 = vadd.f32 -1.0, %v589_v43 }
 0x4cd   :  { %v593_v46 = vsel %vm245_vm3, %v1383_v44, %v1473_v42 }
 0x4ce   :  { %v595_v47 = vmul.f32 %v1475_v45, %v593_v46 }
 0x4d0   :  { %597 = vrot.lane.b32.xlu1 %v595_v47, %s1539_s11 }
 0x542   :  { %v598_v49 = vpop.permute.xlu1 %597 }
 0x543   :  { %v600_v50 = vadd.f32 %v598_v49, %v594_v48  ;;  %v177_v48 = vadd.f32 %v1862_v61, %v1744_v28  ;;  %v179_v49 = vadd.f32 %v1864_v62, %v1748_v30 }
 0x545   :  { %1476 = vtanh.f32 %v600_v50 }
 0x552   :  { %v1477_v51 = vpop.eup %1476 }
 0x553   :  { %v602_v52 = vmul.f32 %v1477_v51, %v593_v46 }
 0x555   :  { %606 = vrot.lane.b32.xlu0 %v602_v52, %s1539_s11 }
 0x5c7   :  { %v607_v54 = vpop.permute.xlu0 %606 }
 0x5c8   :  { %1384 = vmatmul.mubr.msk.f32.vlgmr.msra.gmra.mxu1 %vm265_vm2, %v607_v54 }
 0x5c9   :  { %845 = vmatpush1.msra.mxu1 %v1594_v1  ;;  %892 = vmatprep.mubr.f32.mxu1 %v1538_v3 }
 0x5ca   :  { %846 = vmatprep.subr.mxu1 %v1599_v2 }
 0x5cb   :  { %847 = vmatpush1.msra.mxu1 %v1607_v4 }
 0x5cc   :  { %848 = vmatprep.subr.mxu1 %v1613_v5 }
 0x5cd   :  { %849 = vmatpush1.msra.mxu1 %v1619_v6 }
 0x5ce   :  { %850 = vmatprep.subr.mxu1 %v1628_v8 }
 0x5cf   :  { %851 = vmatpush1.msra.mxu1 %v1634_v10 }
 0x5d0   :  { %852 = vmatprep.subr.mxu1 %v1643_v12 }
 0x5d1   :  { %853 = vmatpush1.msra.mxu1 %v1654_v14 }
 0x5d2   :  { %854 = vmatprep.subr.mxu1 %v1660_v15 }
 0x5d3   :  { %855 = vmatpush1.msra.mxu1 %v1667_v16 }
 0x5d4   :  { %856 = vmatprep.subr.mxu1 %v1675_v17 }
 0x5d5   :  { %857 = vmatpush1.msra.mxu1 %v1682_v18 }
 0x5d6   :  { %858 = vmatprep.subr.mxu1 %v1689_v19 }
 0x5d7   :  { %859 = vmatpush1.msra.mxu1 %v1696_v20 }
 0x5d8   :  { %1062 = vmatprep.subr.mxu1 %v1589_v0 }
 0x688   :  { %v676_v53 = vpop.f32.mrf.mxu1 }
 0x689   :  { %v677_v58 = vadd.f32 %v676_v53, %v171_v55 }
 0x68a   :  { %v678_v57 = vpop.f32.mrf.mxu1 }
 0x68b   :  { %v679_v24 = vadd.f32 %v678_v57, %v173_v56  ;;  %v1385_v26 = vmul.f32 -1.442695, %v677_v58 }
 0x68d   :  { %v682_v25 = vadd.f32 %v679_v24, %v679_v24 }
 0x68f   :  { %v684_v27 = vsel %vm245_vm3, %v682_v25, %v679_v24 }
 0x690   :  { %v1386_v31 = vmul.f32 -1.442695, %v684_v27 }
 0x692   :  { %1478 = vpow2.f32 %v1386_v31 }
 0x693   :  { %1480 = vpow2.f32 %v1385_v26 }
 0x69f   :  { %v1479_v32 = vpop.eup %1478 }
 0x6a0   :  { %v1481_v34 = vpop.eup %1480  ;;  %v692_v35 = vadd.f32 1.0, %v1479_v32 }
 0x6a1   :  { %v691_v36 = vadd.f32 1.0, %v1481_v34 }
 0x6a2   :  { %1482 = vrcp.f32 %v692_v35 }
 0x6a3   :  { %1484 = vrcp.f32 %v691_v36 }
 0x6af   :  { %v1483_v59 = vpop.eup %1482 }
 0x6b0   :  { %v698_v37 = vadd.f32 %v1483_v59, %v1483_v59  ;;  %v1485_v38 = vpop.eup %1484 }
 0x6b1   :  { %v703_v41 = vmul.f32 %v1485_v38, %v600_v50 }
 0x6b2   :  { %v1388_v60 = vadd.f32 -1.0, %v698_v37 }
 0x6b4   :  { %v702_v39 = vsel %vm245_vm3, %v1388_v60, %v1483_v59 }
 0x6b5   :  { %v704_v40 = vmul.f32 %v1485_v38, %v702_v39  ;;  %v183_v38 = vadd.f32 %v1866_v63, %v1744_v28 }
 0x6b7   :  { %706 = vrot.lane.b32.xlu1 %v704_v40, %s1539_s11 }
 0x729   :  { %v707_v42 = vpop.permute.xlu1 %706 }
 0x72a   :  { %v709_v43 = vadd.f32 %v707_v42, %v703_v41 }
 0x72c   :  { %1486 = vtanh.f32 %v709_v43 }
 0x739   :  { %v1487_v44 = vpop.eup %1486 }
 0x73a   :  { %v711_v45 = vmul.f32 %v1487_v44, %v702_v39  ;;  %v185_v39 = vadd.f32 %v1868_v7, %v1748_v30 }
 0x73c   :  { %715 = vrot.lane.b32.xlu0 %v711_v45, %s1539_s11 }
 0x7ae   :  { %v716_v46 = vpop.permute.xlu0 %715 }
 0x7af   :  { %1389 = vmatmul.mubr.msk.f32.vlgmr.msra.gmra.mxu0 %vm265_vm2, %v716_v46 }
 0x7b0   :  { %954 = vmatpush1.msra.mxu0 %v1594_v1  ;;  %1001 = vmatprep.mubr.f32.mxu0 %v1538_v3 }
 0x7b1   :  { %955 = vmatprep.subr.mxu0 %v1599_v2 }
 0x7b2   :  { %956 = vmatpush1.msra.mxu0 %v1607_v4 }
 0x7b3   :  { %957 = vmatprep.subr.mxu0 %v1613_v5 }
 0x7b4   :  { %958 = vmatpush1.msra.mxu0 %v1619_v6 }
 0x7b5   :  { %959 = vmatprep.subr.mxu0 %v1628_v8 }
 0x7b6   :  { %960 = vmatpush1.msra.mxu0 %v1634_v10 }
 0x7b7   :  { %961 = vmatprep.subr.mxu0 %v1643_v12 }
 0x7b8   :  { %962 = vmatpush1.msra.mxu0 %v1654_v14 }
 0x7b9   :  { %963 = vmatprep.subr.mxu0 %v1660_v15 }
 0x7ba   :  { %964 = vmatpush1.msra.mxu0 %v1667_v16 }
 0x7bb   :  { %965 = vmatprep.subr.mxu0 %v1675_v17 }
 0x7bc   :  { %966 = vmatpush1.msra.mxu0 %v1682_v18 }
 0x7bd   :  { %967 = vmatprep.subr.mxu0 %v1689_v19 }
 0x7be   :  { %968 = vmatpush1.msra.mxu0 %v1696_v20 }
 0x7bf   :  { %1171 = vmatprep.subr.mxu0 %v1589_v0 }
 0x86f   :  { %v785_v47 = vpop.f32.mrf.mxu0 }
 0x870   :  { %v786_v51 = vadd.f32 %v785_v47, %v177_v48 }
 0x871   :  { %v787_v50 = vpop.f32.mrf.mxu0 }
 0x872   :  { %v788_v52 = vadd.f32 %v787_v50, %v179_v49  ;;  %v1390_v53 = vmul.f32 -1.442695, %v786_v51 }
 0x874   :  { %v791_v54 = vadd.f32 %v788_v52, %v788_v52 }
 0x876   :  { %v793_v55 = vsel %vm245_vm3, %v791_v54, %v788_v52 }
 0x877   :  { %v1391_v56 = vmul.f32 -1.442695, %v793_v55 }
 0x879   :  { %1488 = vpow2.f32 %v1391_v56 }
 0x87a   :  { %1490 = vpow2.f32 %v1390_v53 }
 0x886   :  { %v1489_v57 = vpop.eup %1488 }
 0x887   :  { %v1491_v0 = vpop.eup %1490  ;;  %v801_v58 = vadd.f32 1.0, %v1489_v57 }
 0x888   :  { %v800_v24 = vadd.f32 1.0, %v1491_v0 }
 0x889   :  { %1492 = vrcp.f32 %v801_v58 }
 0x88a   :  { %1494 = vrcp.f32 %v800_v24 }
 0x896   :  { %v1493_v61 = vpop.eup %1492 }
 0x897   :  { %v807_v25 = vadd.f32 %v1493_v61, %v1493_v61  ;;  %v1495_v26 = vpop.eup %1494 }
 0x898   :  { %v812_v32 = vmul.f32 %v1495_v26, %v709_v43 }
 0x899   :  { %v1393_v62 = vadd.f32 -1.0, %v807_v25 }
 0x89b   :  { %v811_v27 = vsel %vm245_vm3, %v1393_v62, %v1493_v61 }
 0x89c   :  { %v813_v31 = vmul.f32 %v1495_v26, %v811_v27 }
 0x89e   :  { %815 = vrot.lane.b32.xlu1 %v813_v31, %s1539_s11 }
 0x910   :  { %v816_v34 = vpop.permute.xlu1 %815 }
 0x911   :  { %v818_v35 = vadd.f32 %v816_v34, %v812_v32 }
 0x913   :  { %1496 = vtanh.f32 %v818_v35 }
 0x920   :  { %v1497_v36 = vpop.eup %1496 }
 0x921   :  { %v820_v59 = vmul.f32 %v1497_v36, %v811_v27 }
 0x923   :  { %824 = vrot.lane.b32.xlu0 %v820_v59, %s1539_s11  ;;  %v195_v59 = vadd.f32 %v1874_v13, %v1744_v28 }
 0x995   :  { %v825_v37 = vpop.permute.xlu0 %824 }
 0x996   :  { %1394 = vmatmul.mubr.msk.f32.vlgmr.msra.gmra.mxu1 %vm265_vm2, %v825_v37  ;;  %v197_v37 = vadd.f32 %v1876_v21, %v1748_v30 }
 0x997   :  { %1063 = vmatpush1.msra.mxu1 %v1594_v1  ;;  %1110 = vmatprep.mubr.f32.mxu1 %v1538_v3 }
 0x998   :  { %1064 = vmatprep.subr.mxu1 %v1599_v2 }
 0x999   :  { %1065 = vmatpush1.msra.mxu1 %v1607_v4 }
 0x99a   :  { %1066 = vmatprep.subr.mxu1 %v1613_v5 }
 0x99b   :  { %1067 = vmatpush1.msra.mxu1 %v1619_v6 }
 0x99c   :  { %1068 = vmatprep.subr.mxu1 %v1628_v8 }
 0x99d   :  { %1069 = vmatpush1.msra.mxu1 %v1634_v10 }
 0x99e   :  { %1070 = vmatprep.subr.mxu1 %v1643_v12 }
 0x99f   :  { %1071 = vmatpush1.msra.mxu1 %v1654_v14 }
 0x9a0   :  { %1072 = vmatprep.subr.mxu1 %v1660_v15 }
 0x9a1   :  { %1073 = vmatpush1.msra.mxu1 %v1667_v16 }
 0x9a2   :  { %1074 = vmatprep.subr.mxu1 %v1675_v17 }
 0x9a3   :  { %1075 = vmatpush1.msra.mxu1 %v1682_v18 }
 0x9a4   :  { %1076 = vmatprep.subr.mxu1 %v1689_v19 }
 0x9a5   :  { %1077 = vmatpush1.msra.mxu1 %v1696_v20 }
 0x9a6   :  { %1425 = vmatprep.subr.mxu1 %v1538_v3 }
 0xa56   :  { %v894_v60 = vpop.f32.mrf.mxu1 }
 0xa57   :  { %v895_v41 = vadd.f32 %v894_v60, %v183_v38 }
 0xa58   :  { %v896_v40 = vpop.f32.mrf.mxu1 }
 0xa59   :  { %v897_v42 = vadd.f32 %v896_v40, %v185_v39  ;;  %v1395_v44 = vmul.f32 -1.442695, %v895_v41 }
 0xa5b   :  { %v900_v43 = vadd.f32 %v897_v42, %v897_v42 }
 0xa5d   :  { %v902_v45 = vsel %vm245_vm3, %v900_v43, %v897_v42 }
 0xa5e   :  { %v1396_v46 = vmul.f32 -1.442695, %v902_v45 }
 0xa60   :  { %1498 = vpow2.f32 %v1396_v46 }
 0xa61   :  { %1500 = vpow2.f32 %v1395_v44 }
 0xa6d   :  { %v1499_v47 = vpop.eup %1498 }
 0xa6e   :  { %v1501_v48 = vpop.eup %1500  ;;  %v910_v49 = vadd.f32 1.0, %v1499_v47 }
 0xa6f   :  { %v909_v50 = vadd.f32 1.0, %v1501_v48 }
 0xa70   :  { %1502 = vrcp.f32 %v910_v49 }
 0xa71   :  { %1504 = vrcp.f32 %v909_v50 }
 0xa7d   :  { %v1503_v63 = vpop.eup %1502 }
 0xa7e   :  { %v916_v51 = vadd.f32 %v1503_v63, %v1503_v63  ;;  %v1505_v52 = vpop.eup %1504 }
 0xa7f   :  { %v921_v55 = vmul.f32 %v1505_v52, %v818_v35 }
 0xa80   :  { %v1398_v7 = vadd.f32 -1.0, %v916_v51 }
 0xa82   :  { %v920_v54 = vsel %vm245_vm3, %v1398_v7, %v1503_v63 }
 0xa83   :  { %v922_v53 = vmul.f32 %v1505_v52, %v920_v54 }
 0xa85   :  { %924 = vrot.lane.b32.xlu1 %v922_v53, %s1539_s11 }
 0xaf7   :  { %v925_v56 = vpop.permute.xlu1 %924 }
 0xaf8   :  { %v927_v57 = vadd.f32 %v925_v56, %v921_v55 }
 0xafa   :  { %1506 = vtanh.f32 %v927_v57 }
 0xb07   :  { %v1507_v0 = vpop.eup %1506 }
 0xb08   :  { %v929_v58 = vmul.f32 %v1507_v0, %v920_v54  ;;  %v203_v0 = vadd.f32 %v1880_v23, %v1748_v30 }
 0xb0a   :  { %933 = vrot.lane.b32.xlu0 %v929_v58, %s1539_s11 }
 0xb7c   :  { %v934_v24 = vpop.permute.xlu0 %933 }
 0xb7d   :  { %1399 = vmatmul.mubr.msk.f32.vlgmr.msra.gmra.mxu0 %vm265_vm2, %v934_v24 }
 0xb7e   :  { %1172 = vmatpush1.msra.mxu0 %v1594_v1  ;;  %1219 = vmatprep.mubr.f32.mxu0 %v1538_v3 }
 0xb7f   :  { %1173 = vmatprep.subr.mxu0 %v1599_v2  ;;  %v189_v2 = vadd.f32 %v1870_v9, %v1744_v28 }
 0xb80   :  { %1174 = vmatpush1.msra.mxu0 %v1607_v4  ;;  %v191_v4 = vadd.f32 %v1872_v11, %v1748_v30 }
 0xb81   :  { %1175 = vmatprep.subr.mxu0 %v1613_v5 }
 0xb82   :  { %1176 = vmatpush1.msra.mxu0 %v1619_v6 }
 0xb83   :  { %1177 = vmatprep.subr.mxu0 %v1628_v8 }
 0xb84   :  { %1178 = vmatpush1.msra.mxu0 %v1634_v10 }
 0xb85   :  { %1179 = vmatprep.subr.mxu0 %v1643_v12 }
 0xb86   :  { %1180 = vmatpush1.msra.mxu0 %v1654_v14 }
 0xb87   :  { %1181 = vmatprep.subr.mxu0 %v1660_v15 }
 0xb88   :  { %1182 = vmatpush1.msra.mxu0 %v1667_v16 }
 0xb89   :  { %1183 = vmatprep.subr.mxu0 %v1675_v17 }
 0xb8a   :  { %1184 = vmatpush1.msra.mxu0 %v1682_v18 }
 0xb8b   :  { %1185 = vmatprep.subr.mxu0 %v1689_v19 }
 0xb8c   :  { %1186 = vmatpush1.msra.mxu0 %v1696_v20 }
 0xc3d   :  { %v1003_v1 = vpop.f32.mrf.mxu0 }
 0xc3e   :  { %v1004_v6 = vadd.f32 %v1003_v1, %v189_v2 }
 0xc3f   :  { %v1005_v5 = vpop.f32.mrf.mxu0 }
 0xc40   :  { %v1006_v8 = vadd.f32 %v1005_v5, %v191_v4  ;;  %v1400_v12 = vmul.f32 -1.442695, %v1004_v6 }
 0xc42   :  { %v1009_v10 = vadd.f32 %v1006_v8, %v1006_v8 }
 0xc44   :  { %v1011_v14 = vsel %vm245_vm3, %v1009_v10, %v1006_v8 }
 0xc45   :  { %v1401_v15 = vmul.f32 -1.442695, %v1011_v14 }
 0xc47   :  { %1508 = vpow2.f32 %v1401_v15 }
 0xc48   :  { %1510 = vpow2.f32 %v1400_v12 }
 0xc54   :  { %v1509_v16 = vpop.eup %1508 }
 0xc55   :  { %v1511_v17 = vpop.eup %1510  ;;  %v1019_v18 = vadd.f32 1.0, %v1509_v16 }
 0xc56   :  { %v1018_v19 = vadd.f32 1.0, %v1511_v17  ;;  %v1270_v17 = vld [vmem:[%s2072_s6 + $0x38] sm:$0xff] }
 0xc57   :  { %1512 = vrcp.f32 %v1019_v18  ;;  %v1269_v18 = vld [vmem:[%s2072_s6 + $0x30] sm:$0xff] }
 0xc58   :  { %1514 = vrcp.f32 %v1018_v19  ;;  %v1268_v19 = vld [vmem:[%s2072_s6 + $0x28] sm:$0xff] }
 0xc64   :  { %v1513_v20 = vpop.eup %1512 }
 0xc65   :  { %v1025_v9 = vadd.f32 %v1513_v20, %v1513_v20  ;;  %v1515_v61 = vpop.eup %1514 }
 0xc66   :  { %v1030_v26 = vmul.f32 %v1515_v61, %v927_v57  ;;  %v201_v57 = vadd.f32 %v1878_v22, %v1744_v28 }
 0xc67   :  { %v1403_v11 = vadd.f32 -1.0, %v1025_v9  ;;  %v1265_v9 = vld [vmem:[%s2072_s6 + $0x10] sm:$0xff] }
 0xc69   :  { %v1029_v25 = vsel %vm245_vm3, %v1403_v11, %v1513_v20  ;;  %v1266_v20 = vld [vmem:[%s2072_s6 + $0x18] sm:$0xff]  ;;  %v1264_v11 = vld [vmem:[%s2072_s6 + $0x8] sm:$0xff] }
 0xc6a   :  { %v1031_v62 = vmul.f32 %v1515_v61, %v1029_v25 }
 0xc6c   :  { %1033 = vrot.lane.b32.xlu1 %v1031_v62, %s1539_s11 }
 0xcde   :  { %v1034_v27 = vpop.permute.xlu1 %1033 }
 0xcdf   :  { %v1036_v31 = vadd.f32 %v1034_v27, %v1030_v26  ;;  %v1263_v26 = vld [vmem:[%s2072_s6] sm:$0xff] }
 0xce1   :  { %1516 = vtanh.f32 %v1036_v31 }
 0xcee   :  { %v1517_v32 = vpop.eup %1516 }
 0xcef   :  { %v1038_v34 = vmul.f32 %v1517_v32, %v1029_v25 }
 0xcf1   :  { %1042 = vrot.lane.b32.xlu0 %v1038_v34, %s1539_s11 }
 0xd63   :  { %v1043_v35 = vpop.permute.xlu0 %1042 }
 0xd64   :  { %1404 = vmatmul.mubr.msk.f32.vlgmr.msra.gmra.mxu1 %vm265_vm2, %v1043_v35  ;;  %v1414_v35 = vld [vmem:[%s2073_s7] ss:$0 sm:$0xff] }
 0xd65   :  { %1426 = vmatpush3.msra.mxu1 %v1270_v17  ;;  %1441 = vmatprep.mubr.msk.f32.mxu1 %vm1540_vm5, %v1538_v3 }
 0xd66   :  { %1427 = vmatprep.subr.mxu1 %v1538_v3 }
 0xd67   :  { %1428 = vmatpush3.msra.mxu1 %v1269_v18 }
 0xd68   :  { %1429 = vmatprep.subr.mxu1 %v1538_v3 }
 0xd69   :  { %1430 = vmatpush3.msra.mxu1 %v1268_v19 }
 0xd6a   :  { %1431 = vmatprep.subr.mxu1 %v1538_v3 }
 0xd6b   :  { %1432 = vmatpush3.msra.mxu1 %v1267_v33 }
 0xd6c   :  { %1433 = vmatprep.subr.mxu1 %v1538_v3 }
 0xd6d   :  { %1434 = vmatpush3.msra.mxu1 %v1266_v20 }
 0xd6e   :  { %1435 = vmatprep.subr.mxu1 %v1538_v3 }
 0xd6f   :  { %1436 = vmatpush3.msra.mxu1 %v1265_v9 }
 0xd70   :  { %1437 = vmatprep.subr.mxu1 %v1538_v3 }
 0xd71   :  { %1438 = vmatpush3.msra.mxu1 %v1264_v11 }
 0xd72   :  { %1439 = vmatprep.subr.mxu1 %v1538_v3 }
 0xd73   :  { %1440 = vmatpush3.msra.mxu1 %v1263_v26 }
 0xe24   :  { %v1112_v36 = vpop.f32.mrf.mxu1 }
 0xe25   :  { %v1113_v38 = vadd.f32 %v1112_v36, %v195_v59 }
 0xe26   :  { %v1114_v60 = vpop.f32.mrf.mxu1 }
 0xe27   :  { %v1115_v39 = vadd.f32 %v1114_v60, %v197_v37  ;;  %v1405_v41 = vmul.f32 -1.442695, %v1113_v38 }
 0xe29   :  { %v1118_v40 = vadd.f32 %v1115_v39, %v1115_v39 }
 0xe2b   :  { %v1120_v42 = vsel %vm245_vm3, %v1118_v40, %v1115_v39 }
 0xe2c   :  { %v1406_v43 = vmul.f32 -1.442695, %v1120_v42 }
 0xe2e   :  { %1518 = vpow2.f32 %v1406_v43 }
 0xe2f   :  { %1520 = vpow2.f32 %v1405_v41 }
 0xe3b   :  { %v1519_v44 = vpop.eup %1518 }
 0xe3c   :  { %v1521_v45 = vpop.eup %1520  ;;  %v1128_v46 = vadd.f32 1.0, %v1519_v44 }
 0xe3d   :  { %v1127_v47 = vadd.f32 1.0, %v1521_v45 }
 0xe3e   :  { %1522 = vrcp.f32 %v1128_v46 }
 0xe3f   :  { %1524 = vrcp.f32 %v1127_v47 }
 0xe4b   :  { %v1523_v13 = vpop.eup %1522 }
 0xe4c   :  { %v1134_v48 = vadd.f32 %v1523_v13, %v1523_v13  ;;  %v1525_v49 = vpop.eup %1524 }
 0xe4d   :  { %v1139_v51 = vmul.f32 %v1525_v49, %v1036_v31 }
 0xe4e   :  { %v1408_v21 = vadd.f32 -1.0, %v1134_v48 }
 0xe50   :  { %v1138_v50 = vsel %vm245_vm3, %v1408_v21, %v1523_v13 }
 0xe51   :  { %v1140_v63 = vmul.f32 %v1525_v49, %v1138_v50 }
 0xe53   :  { %1142 = vrot.lane.b32.xlu1 %v1140_v63, %s1539_s11 }
 0xec5   :  { %v1143_v7 = vpop.permute.xlu1 %1142 }
 0xec6   :  { %v1145_v52 = vadd.f32 %v1143_v7, %v1139_v51 }
 0xec8   :  { %1526 = vtanh.f32 %v1145_v52 }
 0xed5   :  { %v1527_v54 = vpop.eup %1526 }
 0xed6   :  { %v1147_v53 = vmul.f32 %v1527_v54, %v1138_v50 }
 0xed8   :  { %1151 = vrot.lane.b32.xlu0 %v1147_v53, %s1539_s11 }
 0xf4a   :  { %v1152_v55 = vpop.permute.xlu0 %1151 }
 0xf4b   :  { %1409 = vmatmul.mubr.msk.f32.vlgmr.msra.gmra.mxu0 %vm265_vm2, %v1152_v55 }
0x100b   :  { %v1221_v56 = vpop.f32.mrf.mxu0 }
0x100c   :  { %v1222_v24 = vadd.f32 %v1221_v56, %v201_v57 }
0x100d   :  { %v1223_v58 = vpop.f32.mrf.mxu0 }
0x100e   :  { %v1224_v1 = vadd.f32 %v1223_v58, %v203_v0  ;;  %v1410_v4 = vmul.f32 -1.442695, %v1222_v24 }
0x1010   :  { %v1227_v2 = vadd.f32 %v1224_v1, %v1224_v1 }
0x1012   :  { %v1229_v5 = vsel %vm245_vm3, %v1227_v2, %v1224_v1 }
0x1013   :  { %v1411_v6 = vmul.f32 -1.442695, %v1229_v5 }
0x1015   :  { %1528 = vpow2.f32 %v1411_v6 }
0x1016   :  { %1530 = vpow2.f32 %v1410_v4 }
0x1022   :  { %v1529_v8 = vpop.eup %1528 }
0x1023   :  { %v1531_v10 = vpop.eup %1530  ;;  %v1237_v12 = vadd.f32 1.0, %v1529_v8 }
0x1024   :  { %v1236_v14 = vadd.f32 1.0, %v1531_v10 }
0x1025   :  { %1532 = vrcp.f32 %v1237_v12 }
0x1026   :  { %1534 = vrcp.f32 %v1236_v14 }
0x1032   :  { %v1533_v28 = vpop.eup %1532 }
0x1033   :  { %v1243_v22 = vadd.f32 %v1533_v28, %v1533_v28  ;;  %v1535_v23 = vpop.eup %1534 }
0x1034   :  { %v1248_v61 = vmul.f32 %v1535_v23, %v1145_v52 }
0x1035   :  { %v1413_v30 = vadd.f32 -1.0, %v1243_v22 }
0x1037   :  { %v1247_v15 = vsel %vm245_vm3, %v1413_v30, %v1533_v28 }
0x1038   :  { %v1249_v16 = vmul.f32 %v1535_v23, %v1247_v15 }
0x103a   :  { %1251 = vrot.lane.b32.xlu1 %v1249_v16, %s1539_s11 }
0x10ac   :  { %v1252_v25 = vpop.permute.xlu1 %1251 }
0x10ad   :  { %v1254_v62 = vadd.f32 %v1252_v25, %v1248_v61 }
0x10af   :  { %1536 = vtanh.f32 %v1254_v62 }
0x10bc   :  { %v1537_v27 = vpop.eup %1536 }
0x10bd   :  { %v1256_v31 = vmul.f32 %v1537_v27, %v1247_v15 }
0x10bf   :  { %1259 = vrot.lane.b32.xlu0 %v1256_v31, %s1539_s11 }
0x1131   :  { %v1260_v32 = vpop.permute.xlu0 %1259 }
0x1132   :  { %v1262_v34 = vsel %vm248_vm4, %v1152_v55, %v1260_v32 }
0x1133   :  { %1442 = vmatmul.mubr.msk.f32.vlgmr.msra.gmra.mxu1 %vm265_vm2, %v1262_v34 }
0x11f3   :  { %v1347_v36 = vpop.f32.mrf.mxu1 }
0x11f4   :  { %v1348_v59 = vadd.f32 %v1414_v35, %v1347_v36 }
0x11f5   :  { %v1443_v37 = vpop.f32.mrf.mxu1 }
0x11f6   :  { %1351 = vst.msk [vmem:[%s2074_s8] sm:$0xff] %vm53_vm1, %v1348_v59 }

</bundles_post_ra>
